<compile_context>
chip_gen: v7x
topology: tpu7x:2x2x1
jax: 0.10.0
libtpu: 0.0.40
codegen_flags: <defaults>
</compile_context>

<pallas_src>
import functools
import math

import jax
import jax.numpy as jnp
from jax.experimental import pallas as pl
from jax.experimental.pallas import tpu as pltpu


def _round_up(x, m):
    return (x + m - 1) // m * m


def _linear_kernel(x_ref, w_ref, b_ref, o_ref, *, apply_gelu):
    """One (TM, TN) output tile of y = [gelu](x @ w + b).

    x_ref: (TM, Kp) bf16, w_ref: (Kp, TN) bf16,
    b_ref: (8, TN) f32 (row 0 holds the bias), o_ref: (TM, TN).
    """
    acc = jnp.dot(x_ref[...], w_ref[...], preferred_element_type=jnp.float32)
    acc = acc + b_ref[0:1, :]
    if apply_gelu:
        # TODO(synk): nn.GELU() is the exact erf form; the tanh form is used here
        # (max deviation ~5e-4) because lax.erf lowering inside Mosaic kernels is
        # not guaranteed across JAX versions.
        c0 = 0.7978845608028654  # sqrt(2/pi)
        acc = 0.5 * acc * (1.0 + jnp.tanh(c0 * (acc + 0.044715 * acc * acc * acc)))
    o_ref[...] = acc.astype(o_ref.dtype)


def fused_linear(x2d, weight, bias, *, apply_gelu=False,
                 compute_dtype=jnp.bfloat16, out_dtype=None,
                 tm=256, tn=512):
    """y = [gelu](x2d @ weight.T + bias)  (PyTorch nn.Linear semantics).

    x2d: (M, K), weight: (N, K), bias: (N,).  Returns (M, N) in `out_dtype`
    (defaults to x2d.dtype).
    """
    M, K = x2d.shape
    N, K2 = weight.shape
    assert K2 == K and bias.shape == (N,)
    out_dtype = out_dtype if out_dtype is not None else x2d.dtype

    # Lane-dense, aligned padding: K, N -> multiples of 128; M -> multiple of
    # the row tile so the last tile never reads/writes out of range.
    kp = _round_up(K, 128)
    tm = min(tm, _round_up(M, 8))
    mp = _round_up(M, tm)
    tn = min(tn, _round_up(N, 128))
    np_ = _round_up(N, tn)

    xp = jnp.zeros((mp, kp), compute_dtype).at[:M, :K].set(
        x2d.astype(compute_dtype))
    wp = jnp.zeros((kp, np_), compute_dtype).at[:K, :N].set(
        weight.T.astype(compute_dtype))
    bp = jnp.zeros((8, np_), jnp.float32).at[:, :N].set(
        jnp.broadcast_to(bias.astype(jnp.float32)[None, :], (8, N)))

    grid = (mp // tm, np_ // tn)
    out = pl.pallas_call(
        functools.partial(_linear_kernel, apply_gelu=apply_gelu),
        out_shape=jax.ShapeDtypeStruct((mp, np_), out_dtype),
        grid=grid,
        in_specs=[
            pl.BlockSpec((tm, kp), lambda i, j: (i, 0)),   # activations tile
            pl.BlockSpec((kp, tn), lambda i, j: (0, j)),   # weight column tile
            pl.BlockSpec((8, tn), lambda i, j: (0, j)),    # bias (8-sublane)
        ],
        out_specs=pl.BlockSpec((tm, tn), lambda i, j: (i, j)),
        compiler_params=pltpu.CompilerParams(
            dimension_semantics=("parallel", "parallel"),
            vmem_limit_bytes=64 << 20),
    )(xp, wp, bp)
    return out[:M, :N]


def mlp_projector_forward(cfg, params, x_or_tuple):
    """Forward of MlpProjector.

    cfg: dict with 'projector_type' (and optional 'depth', implied by params).
    params (PyTorch-layout weights):
      'layers'       : list of (weight (out,in), bias (out,)) for nn.Sequential
      'high_up_proj' / 'low_up_proj': (weight, bias) for the hybrid type.
    x_or_tuple: (B, S, C) array, or (high_x, low_x) tuple of such arrays.
    Returns (B, S, n_embed).
    """
    ptype = cfg["projector_type"]
    layers = params.get("layers", [])

    if isinstance(x_or_tuple, tuple):
        high_x, low_x = x_or_tuple
        B, S, _ = high_x.shape
        hw, hb = params["high_up_proj"]
        lw, lb = params["low_up_proj"]
        # When self.layers starts with a GELU (depth > 1) it acts elementwise
        # on the concat, so it can be fused into each up-projection's epilogue.
        fuse = len(layers) > 0
        h = fused_linear(high_x.reshape(B * S, -1), hw, hb, apply_gelu=fuse)
        l = fused_linear(low_x.reshape(B * S, -1), lw, lb, apply_gelu=fuse)
        x2d = jnp.concatenate([h, l], axis=-1)
        for i, (w, b) in enumerate(layers):
            x2d = fused_linear(x2d, w, b, apply_gelu=(i < len(layers) - 1))
        return x2d.reshape(B, S, -1)

    x = x_or_tuple
    if ptype == "identity":
        return x
    B, S, _ = x.shape
    x2d = x.reshape(B * S, -1)
    for i, (w, b) in enumerate(layers):
        # In 'mlp_gelu' every Linear except the last is followed by a GELU.
        x2d = fused_linear(
            x2d, w, b,
            apply_gelu=(ptype == "mlp_gelu" and i < len(layers) - 1))
    return x2d.reshape(B, S, -1)


def _ref_forward(cfg, params, x_or_tuple):
    """Pure-JAX (f32, exact-erf GELU) reference mirroring the PyTorch module."""
    gelu = lambda v: jax.nn.gelu(v, approximate=False)
    ptype = cfg["projector_type"]
    layers = params.get("layers", [])
    if isinstance(x_or_tuple, tuple):
        hx, lx = x_or_tuple
        hw, hb = params["high_up_proj"]
        lw, lb = params["low_up_proj"]
        x = jnp.concatenate([hx @ hw.T + hb, lx @ lw.T + lb], axis=-1)
        for (w, b) in layers:
            x = gelu(x) @ w.T + b
        return x
    x = x_or_tuple
    if ptype == "identity":
        return x
    if ptype == "linear":
        (w, b), = layers
        return x @ w.T + b
    w0, b0 = layers[0]
    x = x @ w0.T + b0
    for (w, b) in layers[1:]:
        x = gelu(x) @ w.T + b
    return x


if __name__ == "__main__":
    key = jax.random.PRNGKey(0)
    B, S = 2, 8
    input_dim, n_embed, depth = 32, 32, 2

    def make_linear(k, out_f, in_f):
        kw, kb = jax.random.split(k)
        s = 1.0 / math.sqrt(in_f)
        w = jax.random.uniform(kw, (out_f, in_f), jnp.float32, -s, s)
        b = jax.random.uniform(kb, (out_f,), jnp.float32, -s, s)
        return w, b

    keys = jax.random.split(key, 10)
    x = jax.random.normal(keys[0], (B, S, input_dim), jnp.float32)
    high_x = jax.random.normal(keys[1], (B, S, input_dim), jnp.float32)
    low_x = jax.random.normal(keys[2], (B, S, input_dim), jnp.float32)

    def check(name, cfg, params, inp):
        out = jax.block_until_ready(mlp_projector_forward(cfg, params, inp))
        ref = _ref_forward(cfg, params, inp)
        assert out.shape == ref.shape, (name, out.shape, ref.shape)
        err = float(jnp.max(jnp.abs(out.astype(jnp.float32) - ref)))
        assert jnp.allclose(out.astype(jnp.float32), ref,
                            atol=3e-2, rtol=3e-2), (name, err)

    # 1) projector_type='linear'
    cfg = {"projector_type": "linear"}
    params = {"layers": [make_linear(keys[3], n_embed, input_dim)]}
    check("linear", cfg, params, x)

    # 2) projector_type='mlp_gelu', depth=2
    cfg = {"projector_type": "mlp_gelu", "depth": depth}
    params = {"layers": [make_linear(keys[4], n_embed, input_dim),
                         make_linear(keys[5], n_embed, n_embed)]}
    check("mlp_gelu", cfg, params, x)

    # 3) projector_type='low_high_hybrid_split_mlp_gelu', depth=2 (tuple input)
    cfg = {"projector_type": "low_high_hybrid_split_mlp_gelu", "depth": depth}
    params = {"high_up_proj": make_linear(keys[6], n_embed // 2, input_dim),
              "low_up_proj": make_linear(keys[7], n_embed // 2, input_dim),
              "layers": [make_linear(keys[8], n_embed, n_embed)]}
    check("hybrid", cfg, params, (high_x, low_x))

    # 4) projector_type='identity'
    cfg = {"projector_type": "identity"}
    check("identity", cfg, {}, x)

    print("KERNEL_OK")
</pallas_src>

<mosaic_0001>
module attributes {stable_mosaic.version = 11 : i64} {
  func.func @_linear_kernel(%arg0: i32, %arg1: i32, %arg2: memref<16x128xbf16, #tpu.memory_space<vmem>>, %arg3: memref<128x128xbf16, #tpu.memory_space<vmem>>, %arg4: memref<8x128xf32, #tpu.memory_space<vmem>>, %arg5: memref<16x128xf32, #tpu.memory_space<vmem>>) attributes {dimension_semantics = [#tpu.dimension_semantics<parallel>, #tpu.dimension_semantics<parallel>], iteration_bounds = array<i64: 1, 1>, scalar_prefetch = 0 : i64, scratch_operands = 0 : i64, tpu.core_type = #tpu.core_type<tc>, window_params = [{transform_indices = @transform_0, window_bounds = array<i64: 16, 128>}, {transform_indices = @transform_1, window_bounds = array<i64: 128, 128>}, {transform_indices = @transform_2, window_bounds = array<i64: 8, 128>}, {transform_indices = @transform_3, window_bounds = array<i64: 16, 128>}]} {
    %c0 = arith.constant 0 : index
    %c0_0 = arith.constant 0 : index
    %0 = vector.load %arg2[%c0, %c0_0] : memref<16x128xbf16, #tpu.memory_space<vmem>>, vector<16x128xbf16>
    %c0_1 = arith.constant 0 : index
    %c0_2 = arith.constant 0 : index
    %1 = vector.load %arg3[%c0_1, %c0_2] : memref<128x128xbf16, #tpu.memory_space<vmem>>, vector<128x128xbf16>
    %cst = arith.constant dense<0.000000e+00> : vector<16x128xf32>
    %2 = tpu.matmul %0, %1, %cst {dimension_numbers = #tpu.dot_dimension_numbers<[1], [0], [0], [1], [0, 0, 1, 1], [], []>} : vector<16x128xbf16>, vector<128x128xbf16>, vector<16x128xf32> -> vector<16x128xf32>
    %c0_3 = arith.constant 0 : index
    %c0_4 = arith.constant 0 : index
    %3 = vector.load %arg4[%c0_3, %c0_4] : memref<8x128xf32, #tpu.memory_space<vmem>>, vector<1x128xf32>
    %4 = vector.broadcast %3 : vector<1x128xf32> to vector<16x128xf32>
    %5 = arith.addf %2, %4 : vector<16x128xf32>
    %c0_5 = arith.constant 0 : index
    %c0_6 = arith.constant 0 : index
    %6 = vector.load %arg5[%c0_5, %c0_6] : memref<16x128xf32, #tpu.memory_space<vmem>>, vector<16x128xf32>
    tpu.vector_store %arg5[%c0_5, %c0_6], %5 {strides = array<i32>} : memref<16x128xf32, #tpu.memory_space<vmem>>, vector<16x128xf32>,
    return
  }
  func.func @transform_0(%arg0: i32, %arg1: i32) -> (i32, i32) {
    %c0_i32 = arith.constant 0 : i32
    %c0_i32_0 = arith.constant 0 : i32
    return %arg0, %c0_i32 : i32, i32
  }
  func.func @transform_1(%arg0: i32, %arg1: i32) -> (i32, i32) {
    %c0_i32 = arith.constant 0 : i32
    %c0_i32_0 = arith.constant 0 : i32
    return %c0_i32, %arg1 : i32, i32
  }
  func.func @transform_2(%arg0: i32, %arg1: i32) -> (i32, i32) {
    %c0_i32 = arith.constant 0 : i32
    %c0_i32_0 = arith.constant 0 : i32
    return %c0_i32, %arg1 : i32, i32
  }
  func.func @transform_3(%arg0: i32, %arg1: i32) -> (i32, i32) {
    %c0_i32 = arith.constant 0 : i32
    return %arg0, %arg1 : i32, i32
  }
}

</mosaic_0001>

<bundles_post_ra>
// kernel: tpu_custom_call.1
= control target key start
LH: loop header
LB: loop body
LE: loop exit
PB: predicated region body
PF: predicated region fallthrough
CT: control target
= control target key end

     0   :  { %8 = vsyncpa [#allocation3], 0  ;;  %s430_s0 = inlined_call_operand.hbm [shape: bf16[16,128], index: 0, kind: input, shape index: {}]   ;;  %s431_s1 = inlined_call_operand.hbm [shape: bf16[128,128], index: 1, kind: input, shape index: {}]   ;;  %s432_s2 = inlined_call_operand.hbm [shape: f32[8,128], index: 2, kind: input, shape index: {}]   ;;  %s433_s3 = inlined_call_operand.hbm [shape: f32[16,128], index: 3, kind: output, shape index: {}]  }
   0x1   :  { %9 = vsyncpa [#allocation6], 0 }
   0x2   :  { %10 = vsyncpa [#allocation4], 0  ;;  %s345_s12 = smov [#allocation5]   ;;  %s346_s14 = smov [#allocation2]  }
   0x3   :  { %s28_s13 = sshll.u32 %s345_s12, 4  ;;  %s16_s15 = sshll.u32 %s346_s14, 4  ;;  %s29_s13 = int_to_ptr.vmem [resolvable:$true] %s28_s13  ;;  %s375_s15 = int_to_ptr.vmem [resolvable:$true] %s16_s15 }
   0x4   :  { %s251_s18 = scalar_lea.hbm %s431_s1, 1024 }
   0x5   :  { %p252_p0 = scmp.ne.s32.totalorder %s431_s1, %s251_s18  ;;  %p255_p1 = scmp.lt.u32.totalorder %s251_s18, %s431_s1 }
   0x7   :  { %p257_p2 = pnand %p255_p1, %p252_p0 }
   0x9   :  { %260 = shalt.err (!%p257_p2)
}
   0xa   :  { %s261_s23 = scalar_lea.vmem %s29_s13, 1024  ;;  %p266_p4 = scmp.lt.s32.totalorder %s29_s13, %s29_s13 }
   0xb   :  { %p262_p3 = scmp.ne.s32.totalorder %s29_s13, %s261_s23  ;;  %p267_p5 = scmp.lt.s32.totalorder %s261_s23, %s261_s23 }
   0xd   :  { %p268_p6 = por %p267_p5, %p266_p4 }
   0xf   :  { %p269_p7 = pnand %p268_p6, %p262_p3 }
  0x11   :  { %272 = shalt.err (!%p269_p7)
}
  0x12   :  { %s347_s24 = smov 64   ;;  %s348_s25 = smov 4  }
  0x13   :  { %34 = dma.hbm_to_vmem [thread:$0]  %s431_s1, 1024, %s29_s13, [#allocation6], %s347_s24, %s347_s24, %s348_s25  }
  0x14   :  { %s273_s30 = scalar_lea.hbm %s430_s0, 128 }
  0x15   :  { %p274_p8 = scmp.ne.s32.totalorder %s430_s0, %s273_s30  ;;  %p277_p9 = scmp.lt.u32.totalorder %s273_s30, %s430_s0 }
  0x17   :  { %p279_p10 = pnand %p277_p9, %p274_p8 }
  0x19   :  { %282 = shalt.err (!%p279_p10)
}
  0x1a   :  { %s283_s8 = scalar_lea.vmem %s375_s15, 128  ;;  %p288_p12 = scmp.lt.s32.totalorder %s375_s15, %s375_s15 }
  0x1b   :  { %p284_p11 = scmp.ne.s32.totalorder %s375_s15, %s283_s8  ;;  %p289_p13 = scmp.lt.s32.totalorder %s283_s8, %s283_s8 }
  0x1d   :  { %p290_p0 = por %p289_p13, %p288_p12 }
  0x1f   :  { %p291_p1 = pnand %p290_p0, %p284_p11 }
  0x21   :  { %294 = shalt.err (!%p291_p1)
}
  0x22   :  { %22 = dma.hbm_to_vmem [thread:$0]  %s430_s0, 128, %s375_s15, [#allocation3], %s347_s24, %s347_s24, %s348_s25  }
  0x23   :  { %s349_s10 = smov [#allocation7]   ;;  %s295_s14 = scalar_lea.hbm %s432_s2, 128 }
  0x24   :  { %s41_s11 = sshll.u32 %s349_s10, 4  ;;  %p296_p2 = scmp.ne.s32.totalorder %s432_s2, %s295_s14  ;;  %s42_s11 = int_to_ptr.vmem [resolvable:$true] %s41_s11 }
  0x25   :  { %p299_p3 = scmp.lt.u32.totalorder %s295_s14, %s432_s2 }
  0x27   :  { %p301_p4 = pnand %p299_p3, %p296_p2 }
  0x29   :  { %304 = shalt.err (!%p301_p4)
}
  0x2a   :  { %s305_s20 = scalar_lea.vmem %s42_s11, 128  ;;  %p310_p6 = scmp.lt.s32.totalorder %s42_s11, %s42_s11 }
  0x2b   :  { %p306_p5 = scmp.ne.s32.totalorder %s42_s11, %s305_s20  ;;  %p311_p7 = scmp.lt.s32.totalorder %s305_s20, %s305_s20 }
  0x2d   :  { %p312_p8 = por %p311_p7, %p310_p6 }
  0x2f   :  { %p313_p9 = pnand %p312_p8, %p306_p5 }
  0x31   :  { %316 = shalt.err (!%p313_p9)
}
  0x32   :  { %44 = dma.hbm_to_vmem [thread:$0]  %s432_s2, 128, %s42_s11, [#allocation6]  }
  0x33   :  { %339 = dma.done.wait [#allocation3], 128  }
  0x34   :  { %340 = vsyncadd [#allocation3], 4294967168 }
  0x35   :  { %341 = dma.done.wait [#allocation6], 1152  }
  0x36   :  { %342 = vsyncadd [#allocation6], 4294966144  ;;  %v350_v0 = vmov 0.0   ;;  %vm351_vm0 = vmmov 0   ;;  %v242_v1 = vld [vmem:[#allocation5] sm:$0xff]   ;;  %v243_v2 = vld [vmem:[#allocation5 + $0x8] sm:$0xff]  }
  0x37   :  { %212 = vmatprep.subr.bf16.mxu0 %v350_v0  ;;  %228 = vmatprep.mubr.msk.bf16.mxu0 %vm351_vm0, %v350_v0  ;;  %v244_v3 = vld [vmem:[#allocation5 + $0x10] sm:$0xff]   ;;  %v245_v4 = vld [vmem:[#allocation5 + $0x18] sm:$0xff]   ;;  %v246_v5 = vld [vmem:[#allocation5 + $0x20] sm:$0xff]   ;;  %s352_s2 = smov [#allocation8]  }
  0x38   :  { %213 = vmatpush3.bf16.msra.mxu0 %v242_v1  ;;  %v247_v6 = vld [vmem:[#allocation5 + $0x28] sm:$0xff]   ;;  %v248_v7 = vld [vmem:[#allocation5 + $0x30] sm:$0xff]   ;;  %v249_v8 = vld [vmem:[#allocation5 + $0x38] sm:$0xff]   ;;  %s180_s21 = sshll.u32 %s352_s2, 4  ;;  %s181_s21 = int_to_ptr.vmem [resolvable:$true] %s180_s21 }
  0x39   :  { %214 = vmatprep.subr.bf16.mxu0 %v350_v0  ;;  %v250_v9 = vld [vmem:[#allocation2] sm:$0xff]   ;;  %v193_v10 = vld [vmem:[#allocation7] ss:$0 sm:$0xff]  ;;  %s317_s22 = scalar_lea.vmem %s181_s21, 256  ;;  %p322_p11 = scmp.lt.s32.totalorder %s181_s21, %s181_s21 }
  0x3a   :  { %p318_p10 = scmp.ne.s32.totalorder %s181_s21, %s317_s22  ;;  %p323_p12 = scmp.lt.s32.totalorder %s317_s22, %s317_s22 }
  0x3c   :  { %215 = vmatpush3.bf16.msra.mxu0 %v243_v2  ;;  %p324_p13 = por %p323_p12, %p322_p11 }
  0x3d   :  { %216 = vmatprep.subr.bf16.mxu0 %v350_v0 }
  0x3e   :  { %p325_p0 = pnand %p324_p13, %p318_p10 }
  0x40   :  { %217 = vmatpush3.bf16.msra.mxu0 %v244_v3 }
  0x41   :  { %218 = vmatprep.subr.bf16.mxu0 %v350_v0 }
  0x44   :  { %219 = vmatpush3.bf16.msra.mxu0 %v245_v4 }
  0x45   :  { %220 = vmatprep.subr.bf16.mxu0 %v350_v0 }
  0x48   :  { %221 = vmatpush3.bf16.msra.mxu0 %v246_v5 }
  0x49   :  { %222 = vmatprep.subr.bf16.mxu0 %v350_v0 }
  0x4c   :  { %223 = vmatpush3.bf16.msra.mxu0 %v247_v6 }
  0x4d   :  { %224 = vmatprep.subr.bf16.mxu0 %v350_v0 }
  0x50   :  { %225 = vmatpush3.bf16.msra.mxu0 %v248_v7 }
  0x51   :  { %226 = vmatprep.subr.bf16.mxu0 %v350_v0 }
  0x54   :  { %227 = vmatpush3.bf16.msra.mxu0 %v249_v8 }
  0x57   :  { %229 = vmatmul.mubr.bf16.vlgmr.msra.gmra.mrb[0].mxu0 %v250_v9 }
 0x12a   :  { %v166_v11 = vpop.f32.mrb[0].mxu0 }
 0x12b   :  { %v167_v12 = vadd.f32 %v193_v10, %v166_v11  ;;  %v230_v13 = vpop.f32.mrb[1].mxu0 }
 0x12c   :  { %v169_v14 = vpop.f32.mrb[2].mxu0 }
 0x12d   :  { %173 = vst [vmem:[#allocation8] sm:$0xff] %v167_v12  ;;  %v170_v15 = vadd.f32 %v193_v10, %v169_v14  ;;  %v231_v16 = vpop.f32.mrb[3].mxu0 }
 0x12f   :  { %174 = vst [vmem:[#allocation8 + $0x8] sm:$0xff] %v170_v15 }
 0x130   :  { %328 = shalt.err (!%p325_p0)
}
 0x131   :  { %s329_s25 = scalar_lea.hbm %s433_s3, 256 }
 0x132   :  { %p330_p1 = scmp.ne.s32.totalorder %s433_s3, %s329_s25  ;;  %p333_p2 = scmp.lt.u32.totalorder %s329_s25, %s433_s3 }
 0x134   :  { %p335_p3 = pnand %p333_p2, %p330_p1 }
 0x136   :  { %338 = shalt.err (!%p335_p3)
}
 0x137   :  { %s353_s30 = smov 128   ;;  %s354_s4 = smov 8  }
 0x138   :  { %186 = dma.vmem_to_hbm [thread:$0]  %s181_s21, 256, %s433_s3, [#allocation4], %s353_s30, %s353_s30, %s354_s4  }
 0x139   :  { %343 = dma.done.wait [#allocation4], 256  }
 0x13a   :  { %344 = vsyncadd [#allocation4], 4294967040 }
 0x13b   :  { %190 = vsyncpa [#allocation3], 1 }
 0x13c   :  { %191 = vsyncpa [#allocation6], 1 }
 0x13d   :  { %192 = vsyncpa [#allocation4], 1 }

</bundles_post_ra>
